<compile_context>
chip_gen: v5e
topology: v5e:2x2
jax: 0.10.0
libtpu: 0.0.40
codegen_flags: <defaults>
</compile_context>

<pallas_src>
import jax
import jax.numpy as jnp
from jax import lax
from jax.experimental import pallas as pl
from jax.experimental.pallas import tpu as pltpu


def _mm_nt(a, b):
    """(M, K) x (N, K) -> (M, N) f32: contract the last dim of both operands.

    Operands are cast to bf16 at the MXU boundary; accumulation is f32.  Both
    operands stay in their natural row-major layout, so Mosaic latches the
    (out, in) weight into the MXU directly (no XLU transpose, no VMEM temp).
    """
    return lax.dot_general(a.astype(jnp.bfloat16), b.astype(jnp.bfloat16),
                           (((1,), (1,)), ((), ())),
                           preferred_element_type=jnp.float32)


def _model_kernel(x_ref, w1_ref, b1_ref, w2_ref, b2_ref, w3_ref, b3_ref, out_ref):
    # dense1/2/3 with torch-layout (out, in) weights: act @ W.T via NT dot.
    v1 = _mm_nt(x_ref[...], w1_ref[...]) + b1_ref[...]   # (B, d) f32
    v2 = _mm_nt(v1, w2_ref[...]) + b2_ref[...]           # (B, h) f32
    v3 = _mm_nt(v2, w3_ref[...]) + b3_ref[...]           # (B, n) f32

    # softmax(v3 * 10, axis=-1), all elementwise math in f32 (v5e-friendly).
    s = v3 * 10.0
    m = jnp.max(s, axis=-1, keepdims=True)                # XLU cross-lane max
    e = jnp.exp(s - m)                                    # EUP exp, (B, n)
    denom = jnp.sum(e, axis=-1, keepdims=True)            # XLU reduce, (B, 1)
    v4 = e * pl.reciprocal(denom, approx=True)            # EUP vrcp + VPU scale

    # dropout -> identity (eval mode)

    # v5[i, j] = sum_k v3[i, k] * v4[j, k]  -> one NT MXU matmul, f32 acc.
    out_ref[...] = _mm_nt(v3, v4)                         # (B, B)


def model_forward(x, w1, b1, w2, b2, w3, b3):
    """x: (B, n); w*: torch-style (out, in); b*: (out,). Returns (B, B) f32."""
    B, N = x.shape
    D = w1.shape[0]
    H = w2.shape[0]

    # bf16 matmul operands: halves the dominant HBM traffic (weights + x) and
    # feeds the bf16 MXU path on all generations.  Biases stay f32 (tiny,
    # added to the f32 accumulator).
    x_bf = x.astype(jnp.bfloat16)
    w1_bf = w1.astype(jnp.bfloat16)
    w2_bf = w2.astype(jnp.bfloat16)
    w3_bf = w3.astype(jnp.bfloat16)

    # Biases as (1, out) row vectors (broadcast over batch rows in-kernel).
    b1r = b1.reshape(1, -1)
    b2r = b2.reshape(1, -1)
    b3r = b3.reshape(1, -1)

    full = lambda a: pl.BlockSpec(a.shape, lambda: (0,) * a.ndim,
                                  memory_space=pltpu.VMEM)

    cost = pl.CostEstimate(
        flops=2 * B * (N * D + D * H + H * N + B * N),
        transcendentals=B * N + B,
        bytes_accessed=(2 * (B * N + D * N + H * D + N * H)   # bf16 inputs
                        + 4 * (D + H + N)                      # f32 biases
                        + 4 * B * B),                          # f32 output
    )

    return pl.pallas_call(
        _model_kernel,
        out_shape=jax.ShapeDtypeStruct((B, B), jnp.float32),
        in_specs=[full(x_bf), full(w1_bf), full(b1r),
                  full(w2_bf), full(b2r),
                  full(w3_bf), full(b3r)],
        out_specs=pl.BlockSpec((B, B), lambda: (0, 0), memory_space=pltpu.VMEM),
        cost_estimate=cost,
    )(x_bf, w1_bf, b1r, w2_bf, b2r, w3_bf, b3r)


def _reference(x, w1, b1, w2, b2, w3, b3):
    v1 = x @ w1.T + b1
    v2 = v1 @ w2.T + b2
    v3 = v2 @ w3.T + b3
    v4 = jax.nn.softmax(v3 * 10.0, axis=-1)
    return v3 @ v4.T


if __name__ == "__main__":
    # Lane/sublane-aligned shapes with a lane-dense (128-wide) output:
    # batch B = 128 rows, feature dims n = d = h = 128 lanes.
    B, N, D, H = 128, 128, 128, 128

    key = jax.random.PRNGKey(0)
    k = jax.random.split(key, 7)
    x  = jax.random.normal(k[0], (B, N), dtype=jnp.float32)
    w1 = jax.random.normal(k[1], (D, N), dtype=jnp.float32) * 0.05
    b1 = jax.random.normal(k[2], (D,),   dtype=jnp.float32) * 0.05
    w2 = jax.random.normal(k[3], (H, D), dtype=jnp.float32) * 0.05
    b2 = jax.random.normal(k[4], (H,),   dtype=jnp.float32) * 0.05
    w3 = jax.random.normal(k[5], (N, H), dtype=jnp.float32) * 0.05
    b3 = jax.random.normal(k[6], (N,),   dtype=jnp.float32) * 0.05

    out = model_forward(x, w1, b1, w2, b2, w3, b3)
    out = jax.block_until_ready(out)

    ref = _reference(x, w1, b1, w2, b2, w3, b3)
    assert out.shape == (B, B), out.shape
    # Tolerance covers bf16 MXU operands (amplified by the *10 inside exp) and
    # the approx (EUP) reciprocal, vs the all-f32 XLA reference.
    assert jnp.allclose(out, ref, atol=3e-2, rtol=3e-2), "mismatch vs reference"

    print("KERNEL_OK")
</pallas_src>

<mosaic_0001>
module attributes {stable_mosaic.version = 11 : i64} {
  func.func @_model_kernel(%arg0: memref<128x128xbf16, #tpu.memory_space<vmem>>, %arg1: memref<128x128xbf16, #tpu.memory_space<vmem>>, %arg2: memref<1x128xf32, #tpu.memory_space<vmem>>, %arg3: memref<128x128xbf16, #tpu.memory_space<vmem>>, %arg4: memref<1x128xf32, #tpu.memory_space<vmem>>, %arg5: memref<128x128xbf16, #tpu.memory_space<vmem>>, %arg6: memref<1x128xf32, #tpu.memory_space<vmem>>, %arg7: memref<128x128xf32, #tpu.memory_space<vmem>>) attributes {dimension_semantics = [], scalar_prefetch = 0 : i64, scratch_operands = 0 : i64, tpu.core_type = #tpu.core_type<tc>} {
    %c0 = arith.constant 0 : index
    %c0_0 = arith.constant 0 : index
    %0 = vector.load %arg0[%c0, %c0_0] : memref<128x128xbf16, #tpu.memory_space<vmem>>, vector<128x128xbf16>
    %c0_1 = arith.constant 0 : index
    %c0_2 = arith.constant 0 : index
    %1 = vector.load %arg1[%c0_1, %c0_2] : memref<128x128xbf16, #tpu.memory_space<vmem>>, vector<128x128xbf16>
    %cst = arith.constant dense<0.000000e+00> : vector<128x128xf32>
    %2 = tpu.matmul %0, %1, %cst {dimension_numbers = #tpu.dot_dimension_numbers<[1], [1], [0], [0], [0, 0, 1, 0], [], []>} : vector<128x128xbf16>, vector<128x128xbf16>, vector<128x128xf32> -> vector<128x128xf32>
    %c0_3 = arith.constant 0 : index
    %c0_4 = arith.constant 0 : index
    %3 = vector.load %arg2[%c0_3, %c0_4] : memref<1x128xf32, #tpu.memory_space<vmem>>, vector<1x128xf32>
    %4 = vector.broadcast %3 : vector<1x128xf32> to vector<128x128xf32>
    %5 = arith.addf %2, %4 : vector<128x128xf32>
    %c0_5 = arith.constant 0 : index
    %c0_6 = arith.constant 0 : index
    %6 = vector.load %arg3[%c0_5, %c0_6] : memref<128x128xbf16, #tpu.memory_space<vmem>>, vector<128x128xbf16>
    %7 = arith.truncf %5 : vector<128x128xf32> to vector<128x128xbf16>
    %cst_7 = arith.constant dense<0.000000e+00> : vector<128x128xf32>
    %8 = tpu.matmul %7, %6, %cst_7 {dimension_numbers = #tpu.dot_dimension_numbers<[1], [1], [0], [0], [0, 0, 1, 0], [], []>} : vector<128x128xbf16>, vector<128x128xbf16>, vector<128x128xf32> -> vector<128x128xf32>
    %c0_8 = arith.constant 0 : index
    %c0_9 = arith.constant 0 : index
    %9 = vector.load %arg4[%c0_8, %c0_9] : memref<1x128xf32, #tpu.memory_space<vmem>>, vector<1x128xf32>
    %10 = vector.broadcast %9 : vector<1x128xf32> to vector<128x128xf32>
    %11 = arith.addf %8, %10 : vector<128x128xf32>
    %c0_10 = arith.constant 0 : index
    %c0_11 = arith.constant 0 : index
    %12 = vector.load %arg5[%c0_10, %c0_11] : memref<128x128xbf16, #tpu.memory_space<vmem>>, vector<128x128xbf16>
    %13 = arith.truncf %11 : vector<128x128xf32> to vector<128x128xbf16>
    %cst_12 = arith.constant dense<0.000000e+00> : vector<128x128xf32>
    %14 = tpu.matmul %13, %12, %cst_12 {dimension_numbers = #tpu.dot_dimension_numbers<[1], [1], [0], [0], [0, 0, 1, 0], [], []>} : vector<128x128xbf16>, vector<128x128xbf16>, vector<128x128xf32> -> vector<128x128xf32>
    %c0_13 = arith.constant 0 : index
    %c0_14 = arith.constant 0 : index
    %15 = vector.load %arg6[%c0_13, %c0_14] : memref<1x128xf32, #tpu.memory_space<vmem>>, vector<1x128xf32>
    %16 = vector.broadcast %15 : vector<1x128xf32> to vector<128x128xf32>
    %17 = arith.addf %14, %16 : vector<128x128xf32>
    %cst_15 = arith.constant 1.000000e+01 : f32
    %18 = vector.broadcast %cst_15 : f32 to vector<128x128xf32>
    %19 = arith.mulf %17, %18 : vector<128x128xf32>
    %cst_16 = arith.constant dense<0xFF800000> : vector<128xf32>
    %20 = vector.multi_reduction <maximumf>, %19, %cst_16 [1] : vector<128x128xf32> to vector<128xf32>
    %21 = vector.shape_cast %20 : vector<128xf32> to vector<128x1xf32>
    %22 = vector.broadcast %21 : vector<128x1xf32> to vector<128x128xf32>
    %23 = arith.subf %19, %22 : vector<128x128xf32>
    %24 = math.exp %23 : vector<128x128xf32>
    %cst_17 = arith.constant dense<0.000000e+00> : vector<128xf32>
    %25 = vector.multi_reduction <add>, %24, %cst_17 [1] : vector<128x128xf32> to vector<128xf32>
    %26 = vector.shape_cast %25 : vector<128xf32> to vector<128x1xf32>
    %27 = tpu.reciprocal %26 {approx = true} : vector<128x1xf32> -> vector<128x1xf32>
    %28 = vector.broadcast %27 : vector<128x1xf32> to vector<128x128xf32>
    %29 = arith.mulf %24, %28 : vector<128x128xf32>
    %30 = arith.truncf %17 : vector<128x128xf32> to vector<128x128xbf16>
    %31 = arith.truncf %29 : vector<128x128xf32> to vector<128x128xbf16>
    %cst_18 = arith.constant dense<0.000000e+00> : vector<128x128xf32>
    %32 = tpu.matmul %30, %31, %cst_18 {dimension_numbers = #tpu.dot_dimension_numbers<[1], [1], [0], [0], [0, 0, 1, 0], [], []>} : vector<128x128xbf16>, vector<128x128xbf16>, vector<128x128xf32> -> vector<128x128xf32>
    %c0_19 = arith.constant 0 : index
    %c0_20 = arith.constant 0 : index
    %33 = vector.load %arg7[%c0_19, %c0_20] : memref<128x128xf32, #tpu.memory_space<vmem>>, vector<128x128xf32>
    tpu.vector_store %arg7[%c0_19, %c0_20], %32 {strides = array<i32>} : memref<128x128xf32, #tpu.memory_space<vmem>>, vector<128x128xf32>,
    return
  }
}

</mosaic_0001>

<bundles_post_ra>
// kernel: tpu_custom_call.1
= control target key start
LH: loop header
LB: loop body
LE: loop exit
PB: predicated region body
PF: predicated region fallthrough
CT: control target
= control target key end

     0   :  { %12 = vsyncpa [#allocation3], 0  ;;  %s1408_s0 = inlined_call_operand.hbm [shape: bf16[128,128], index: 0, kind: input, shape index: {}]   ;;  %s1409_s1 = inlined_call_operand.hbm [shape: bf16[128,128], index: 1, kind: input, shape index: {}]   ;;  %s1410_s2 = inlined_call_operand.vmem [shape: f32[1,128], index: 2, kind: input, shape index: {}]   ;;  %s1411_s3 = inlined_call_operand.hbm [shape: bf16[128,128], index: 3, kind: input, shape index: {}]   ;;  %s1412_s4 = inlined_call_operand.vmem [shape: f32[1,128], index: 4, kind: input, shape index: {}]   ;;  %s1413_s5 = inlined_call_operand.hbm [shape: bf16[128,128], index: 5, kind: input, shape index: {}]   ;;  %s1414_s6 = inlined_call_operand.vmem [shape: f32[1,128], index: 6, kind: input, shape index: {}]   ;;  %s1415_s7 = inlined_call_operand.hbm [shape: f32[128,128], index: 7, kind: output, shape index: {}]  }
   0x1   :  { %13 = vsyncpa [#allocation6], 0 }
   0x2   :  { %14 = vsyncpa [#allocation9], 0 }
   0x3   :  { %15 = vsyncpa [#allocation4], 0  ;;  %s33_s26 = sshll.u32 %s1409_s1, 4  ;;  %s1147_s27 = smov [#allocation5]   ;;  %s34_s26 = int_to_ptr.hbm [resolvable:$true] %s33_s26 }
   0x4   :  { %s35_s28 = sshll.u32 %s1147_s27, 4  ;;  %s20_s8 = sshll.u32 %s1408_s0, 4  ;;  %s36_s28 = int_to_ptr.vmem [resolvable:$true] %s35_s28  ;;  %s21_s8 = int_to_ptr.hbm [resolvable:$true] %s20_s8 }
   0x5   :  { %s1148_s9 = smov 64   ;;  %s1149_s10 = smov 4  }
   0x6   :  { %41 = dma.hbm_to_vmem [thread:$0]  %s34_s26, 1024, %s36_s28, [#allocation6], %s1148_s9, %s1148_s9, %s1149_s10  }
   0x7   :  { %s1150_s11 = smov [#allocation2]   ;;  %s48_s15 = sshll.u32 %s1411_s3, 4  ;;  %s49_s15 = int_to_ptr.hbm [resolvable:$true] %s48_s15 }
   0x8   :  { %s22_s12 = sshll.u32 %s1150_s11, 4  ;;  %s63_s17 = sshll.u32 %s1413_s5, 4  ;;  %s23_s12 = int_to_ptr.vmem [resolvable:$true] %s22_s12  ;;  %s64_s17 = int_to_ptr.hbm [resolvable:$true] %s63_s17 }
   0x9   :  { %28 = dma.hbm_to_vmem [thread:$0]  %s21_s8, 1024, %s23_s12, [#allocation3], %s1148_s9, %s1148_s9, %s1149_s10  }
   0xa   :  { %s1151_s18 = smov [#allocation7]   ;;  %s1152_s0 = smov [#allocation8]  }
   0xb   :  { %s50_s19 = sshll.u32 %s1151_s18, 4  ;;  %s65_s20 = sshll.u32 %s1152_s0, 4  ;;  %s51_s19 = int_to_ptr.vmem [resolvable:$true] %s50_s19  ;;  %s66_s20 = int_to_ptr.vmem [resolvable:$true] %s65_s20 }
   0xc   :  { %56 = dma.hbm_to_vmem [thread:$0]  %s49_s15, 1024, %s51_s19, [#allocation6], %s1148_s9, %s1148_s9, %s1149_s10  }
   0xd   :  { %71 = dma.hbm_to_vmem [thread:$0]  %s64_s17, 1024, %s66_s20, [#allocation9], %s1148_s9, %s1148_s9, %s1149_s10  }
   0xe   :  { %1139 = dma.done.wait [#allocation3], 1024  }
   0xf   :  { %1140 = vsyncadd [#allocation3], 4294966272 }
  0x10   :  { %1141 = dma.done.wait [#allocation6], 2048  }
  0x11   :  { %1142 = vsyncadd [#allocation6], 4294965248 }
  0x12   :  { %1143 = dma.done.wait [#allocation9], 1024  }
  0x13   :  { %1144 = vsyncadd [#allocation9], 4294966272  ;;  %v926_v0 = vld [vmem:[#allocation5 + $0x38] sm:$0xff]  ;;  %v925_v1 = vld [vmem:[#allocation5 + $0x30] sm:$0xff]  ;;  %s768_s26 = sshll.u32 %s1415_s7, 4  ;;  %s1154_s27 = smov 128   ;;  %s769_s26 = int_to_ptr.hbm [resolvable:$true] %s768_s26 }
  0x14   :  { %222 = vmatpush.bf16.xpose.msra.mxu0 %v926_v0  ;;  %v924_v2 = vld [vmem:[#allocation5 + $0x28] sm:$0xff]  ;;  %v923_v3 = vld [vmem:[#allocation5 + $0x20] sm:$0xff]  ;;  %v922_v4 = vld [vmem:[#allocation5 + $0x18] sm:$0xff]  ;;  %s1155_s28 = smov 8  }
  0x15   :  { %v921_v5 = vld [vmem:[#allocation5 + $0x10] sm:$0xff]  ;;  %v920_v6 = vld [vmem:[#allocation5 + $0x8] sm:$0xff]  ;;  %v919_v7 = vld [vmem:[#allocation5] sm:$0xff] }
  0x16   :  { %v911_v8 = vld [vmem:[#allocation2] sm:$0xff]  ;;  %v912_v9 = vld [vmem:[#allocation2 + $0x8] sm:$0xff]  ;;  %v913_v10 = vld [vmem:[#allocation2 + $0x10] sm:$0xff] }
  0x17   :  { %v934_v11 = vld [vmem:[#allocation7 + $0x38] sm:$0xff]  ;;  %v933_v13 = vld [vmem:[#allocation7 + $0x30] sm:$0xff]  ;;  %v932_v14 = vld [vmem:[#allocation7 + $0x28] sm:$0xff] }
  0x18   :  { %347 = vmatpush.bf16.xpose.msra.mxu1 %v934_v11  ;;  %v914_v12 = vld [vmem:[#allocation2 + $0x18] sm:$0xff]  ;;  %v915_v15 = vld [vmem:[#allocation2 + $0x20] sm:$0xff]  ;;  %v916_v18 = vld [vmem:[#allocation2 + $0x28] sm:$0xff] }
  0x19   :  { %v931_v16 = vld [vmem:[#allocation7 + $0x20] sm:$0xff]  ;;  %v930_v17 = vld [vmem:[#allocation7 + $0x18] sm:$0xff]  ;;  %v929_v19 = vld [vmem:[#allocation7 + $0x10] sm:$0xff] }
  0x1a   :  { %v928_v20 = vld [vmem:[#allocation7 + $0x8] sm:$0xff]  ;;  %v917_v21 = vld [vmem:[#allocation2 + $0x30] sm:$0xff]  ;;  %v927_v22 = vld [vmem:[#allocation7] sm:$0xff] }
  0x1b   :  { %v918_v23 = vld [vmem:[#allocation2 + $0x38] sm:$0xff]  ;;  %v952_v25 = vld [vmem:[%s1410_s2] ss:$0 sm:$0xff]  ;;  %v941_v46 = vld [vmem:[#allocation8 + $0x30] sm:$0xff] }
  0x1c   :  { %223 = vmatpush.bf16.xpose.msra.mxu0 %v925_v1  ;;  %v942_v41 = vld [vmem:[#allocation8 + $0x38] sm:$0xff]  ;;  %v940_v48 = vld [vmem:[#allocation8 + $0x28] sm:$0xff]  ;;  %v939_v53 = vld [vmem:[#allocation8 + $0x20] sm:$0xff] }
  0x1d   :  { %472 = vmatpush.bf16.xpose.msra.mxu2 %v942_v41  ;;  %v938_v55 = vld [vmem:[#allocation8 + $0x18] sm:$0xff]  ;;  %v937_v60 = vld [vmem:[#allocation8 + $0x10] sm:$0xff]  ;;  %v936_v62 = vld [vmem:[#allocation8 + $0x8] sm:$0xff] }
  0x20   :  { %348 = vmatpush.bf16.xpose.msra.mxu1 %v933_v13 }
  0x24   :  { %224 = vmatpush.bf16.xpose.msra.mxu0 %v924_v2 }
  0x25   :  { %473 = vmatpush.bf16.xpose.msra.mxu2 %v941_v46 }
  0x28   :  { %349 = vmatpush.bf16.xpose.msra.mxu1 %v932_v14 }
  0x2c   :  { %225 = vmatpush.bf16.xpose.msra.mxu0 %v923_v3  ;;  %v935_v3 = vld [vmem:[#allocation8] sm:$0xff] }
  0x2d   :  { %474 = vmatpush.bf16.xpose.msra.mxu2 %v940_v48 }
  0x30   :  { %350 = vmatpush.bf16.xpose.msra.mxu1 %v931_v16 }
  0x34   :  { %226 = vmatpush.bf16.xpose.msra.mxu0 %v922_v4 }
  0x35   :  { %475 = vmatpush.bf16.xpose.msra.mxu2 %v939_v53 }
  0x38   :  { %351 = vmatpush.bf16.xpose.msra.mxu1 %v930_v17 }
  0x3c   :  { %227 = vmatpush.bf16.xpose.msra.mxu0 %v921_v5 }
  0x3d   :  { %476 = vmatpush.bf16.xpose.msra.mxu2 %v938_v55 }
  0x40   :  { %352 = vmatpush.bf16.xpose.msra.mxu1 %v929_v19 }
  0x44   :  { %228 = vmatpush.bf16.xpose.msra.mxu0 %v920_v6 }
  0x45   :  { %477 = vmatpush.bf16.xpose.msra.mxu2 %v937_v60 }
  0x48   :  { %353 = vmatpush.bf16.xpose.msra.mxu1 %v928_v20 }
  0x4c   :  { %229 = vmatpush.bf16.xpose.msra.mxu0 %v919_v7 }
  0x4d   :  { %478 = vmatpush.bf16.xpose.msra.mxu2 %v936_v62 }
  0x50   :  { %354 = vmatpush.bf16.xpose.msra.mxu1 %v927_v22 }
  0x53   :  { %230 = vmatmul.bf16.vlgmr.msra.gmra.mxu0 %v911_v8 }
  0x55   :  { %479 = vmatpush.bf16.xpose.msra.mxu2 %v935_v3 }
  0x63   :  { %235 = vmatmul.bf16.gmra.mxu0 %v912_v9 }
  0x73   :  { %240 = vmatmul.bf16.gmra.mxu0 %v913_v10  ;;  %v953_v10 = vld [vmem:[%s1412_s4] ss:$0 sm:$0xff] }
  0x83   :  { %245 = vmatmul.bf16.gmra.mxu0 %v914_v12 }
  0x93   :  { %250 = vmatmul.bf16.gmra.mxu0 %v915_v15 }
  0xa3   :  { %255 = vmatmul.bf16.gmra.mxu0 %v916_v18 }
  0xb3   :  { %260 = vmatmul.bf16.gmra.mxu0 %v917_v21 }
  0xc3   :  { %265 = vmatmul.bf16.gmra.mxu0 %v918_v23 }
  0xd0   :  { %v231_v24 = vpop.f32.mrf.mxu0 }
  0xd1   :  { %v232_v27 = vadd.f32 %v952_v25, %v231_v24 }
  0xd8   :  { %v233_v26 = vpop.f32.mrf.mxu0 }
  0xd9   :  { %v234_v28 = vadd.f32 %v952_v25, %v233_v26 }
  0xdb   :  { %v287_v29 = vpack.c.bf16 %v234_v28, %v232_v27 }
  0xdd   :  { %355 = vmatmul.bf16.vlgmr.msra.gmra.mxu1 %v287_v29 }
  0xe0   :  { %v236_v30 = vpop.f32.mrf.mxu0 }
  0xe1   :  { %v237_v32 = vadd.f32 %v952_v25, %v236_v30 }
  0xe8   :  { %v238_v31 = vpop.f32.mrf.mxu0 }
  0xe9   :  { %v239_v33 = vadd.f32 %v952_v25, %v238_v31 }
  0xeb   :  { %v288_v34 = vpack.c.bf16 %v239_v33, %v237_v32 }
  0xed   :  { %360 = vmatmul.bf16.gmra.mxu1 %v288_v34 }
  0xf0   :  { %v241_v35 = vpop.f32.mrf.mxu0 }
  0xf1   :  { %v242_v37 = vadd.f32 %v952_v25, %v241_v35 }
  0xf8   :  { %v243_v36 = vpop.f32.mrf.mxu0 }
  0xf9   :  { %v244_v38 = vadd.f32 %v952_v25, %v243_v36 }
  0xfb   :  { %v289_v39 = vpack.c.bf16 %v244_v38, %v242_v37 }
  0xfd   :  { %365 = vmatmul.bf16.gmra.mxu1 %v289_v39 }
 0x100   :  { %v246_v40 = vpop.f32.mrf.mxu0 }
 0x101   :  { %v247_v43 = vadd.f32 %v952_v25, %v246_v40 }
 0x108   :  { %v248_v42 = vpop.f32.mrf.mxu0 }
 0x109   :  { %v249_v44 = vadd.f32 %v952_v25, %v248_v42 }
 0x10b   :  { %v290_v45 = vpack.c.bf16 %v249_v44, %v247_v43 }
 0x10d   :  { %370 = vmatmul.bf16.gmra.mxu1 %v290_v45 }
 0x110   :  { %v251_v47 = vpop.f32.mrf.mxu0 }
 0x111   :  { %v252_v50 = vadd.f32 %v952_v25, %v251_v47 }
 0x118   :  { %v253_v49 = vpop.f32.mrf.mxu0 }
 0x119   :  { %v254_v51 = vadd.f32 %v952_v25, %v253_v49 }
 0x11b   :  { %v291_v52 = vpack.c.bf16 %v254_v51, %v252_v50  ;;  %v954_v51 = vld [vmem:[%s1414_s6] ss:$0 sm:$0xff]  ;;  %s1153_s6 = smov [#allocation10]  }
 0x11c   :  { %s766_s23 = sshll.u32 %s1153_s6, 4  ;;  %s767_s23 = int_to_ptr.vmem [resolvable:$true] %s766_s23 }
 0x11d   :  { %375 = vmatmul.bf16.gmra.mxu1 %v291_v52 }
 0x120   :  { %v256_v54 = vpop.f32.mrf.mxu0 }
 0x121   :  { %v257_v57 = vadd.f32 %v952_v25, %v256_v54 }
 0x128   :  { %v258_v56 = vpop.f32.mrf.mxu0 }
 0x129   :  { %v259_v58 = vadd.f32 %v952_v25, %v258_v56 }
 0x12b   :  { %v292_v59 = vpack.c.bf16 %v259_v58, %v257_v57 }
 0x12d   :  { %380 = vmatmul.bf16.gmra.mxu1 %v292_v59 }
 0x130   :  { %v261_v61 = vpop.f32.mrf.mxu0 }
 0x131   :  { %v262_v0 = vadd.f32 %v952_v25, %v261_v61 }
 0x138   :  { %v263_v63 = vpop.f32.mrf.mxu0 }
 0x139   :  { %v264_v1 = vadd.f32 %v952_v25, %v263_v63 }
 0x13b   :  { %v293_v2 = vpack.c.bf16 %v264_v1, %v262_v0 }
 0x13d   :  { %385 = vmatmul.bf16.gmra.mxu1 %v293_v2 }
 0x140   :  { %v266_v4 = vpop.f32.mrf.mxu0 }
 0x141   :  { %v267_v6 = vadd.f32 %v952_v25, %v266_v4 }
 0x148   :  { %v268_v5 = vpop.f32.mrf.mxu0 }
 0x149   :  { %v269_v7 = vadd.f32 %v952_v25, %v268_v5 }
 0x14b   :  { %v294_v8 = vpack.c.bf16 %v269_v7, %v267_v6 }
 0x14d   :  { %390 = vmatmul.bf16.gmra.mxu1 %v294_v8 }
 0x15a   :  { %v356_v9 = vpop.f32.mrf.mxu1 }
 0x15b   :  { %v357_v12 = vadd.f32 %v953_v10, %v356_v9 }
 0x162   :  { %v358_v11 = vpop.f32.mrf.mxu1 }
 0x163   :  { %v359_v13 = vadd.f32 %v953_v10, %v358_v11 }
 0x165   :  { %v412_v14 = vpack.c.bf16 %v359_v13, %v357_v12 }
 0x167   :  { %480 = vmatmul.bf16.vlgmr.msra.gmra.mxu2 %v412_v14 }
 0x16a   :  { %v361_v15 = vpop.f32.mrf.mxu1 }
 0x16b   :  { %v362_v17 = vadd.f32 %v953_v10, %v361_v15 }
 0x172   :  { %v363_v16 = vpop.f32.mrf.mxu1 }
 0x173   :  { %v364_v18 = vadd.f32 %v953_v10, %v363_v16 }
 0x175   :  { %v413_v19 = vpack.c.bf16 %v364_v18, %v362_v17 }
 0x177   :  { %485 = vmatmul.bf16.gmra.mxu2 %v413_v19 }
 0x17a   :  { %v366_v20 = vpop.f32.mrf.mxu1 }
 0x17b   :  { %v367_v22 = vadd.f32 %v953_v10, %v366_v20 }
 0x182   :  { %v368_v21 = vpop.f32.mrf.mxu1 }
 0x183   :  { %v369_v23 = vadd.f32 %v953_v10, %v368_v21 }
 0x185   :  { %v414_v24 = vpack.c.bf16 %v369_v23, %v367_v22 }
 0x187   :  { %490 = vmatmul.bf16.gmra.mxu2 %v414_v24 }
 0x18a   :  { %v371_v25 = vpop.f32.mrf.mxu1 }
 0x18b   :  { %v372_v27 = vadd.f32 %v953_v10, %v371_v25 }
 0x192   :  { %v373_v26 = vpop.f32.mrf.mxu1 }
 0x193   :  { %v374_v28 = vadd.f32 %v953_v10, %v373_v26 }
 0x195   :  { %v415_v29 = vpack.c.bf16 %v374_v28, %v372_v27 }
 0x197   :  { %495 = vmatmul.bf16.gmra.mxu2 %v415_v29 }
 0x19a   :  { %v376_v30 = vpop.f32.mrf.mxu1 }
 0x19b   :  { %v377_v32 = vadd.f32 %v953_v10, %v376_v30 }
 0x1a2   :  { %v378_v31 = vpop.f32.mrf.mxu1 }
 0x1a3   :  { %v379_v33 = vadd.f32 %v953_v10, %v378_v31 }
 0x1a5   :  { %v416_v34 = vpack.c.bf16 %v379_v33, %v377_v32 }
 0x1a7   :  { %500 = vmatmul.bf16.gmra.mxu2 %v416_v34 }
 0x1aa   :  { %v381_v35 = vpop.f32.mrf.mxu1 }
 0x1ab   :  { %v382_v37 = vadd.f32 %v953_v10, %v381_v35 }
 0x1b2   :  { %v383_v36 = vpop.f32.mrf.mxu1 }
 0x1b3   :  { %v384_v38 = vadd.f32 %v953_v10, %v383_v36 }
 0x1b5   :  { %v417_v39 = vpack.c.bf16 %v384_v38, %v382_v37 }
 0x1b7   :  { %505 = vmatmul.bf16.gmra.mxu2 %v417_v39 }
 0x1ba   :  { %v386_v40 = vpop.f32.mrf.mxu1 }
 0x1bb   :  { %v387_v42 = vadd.f32 %v953_v10, %v386_v40 }
 0x1c2   :  { %v388_v41 = vpop.f32.mrf.mxu1 }
 0x1c3   :  { %v389_v43 = vadd.f32 %v953_v10, %v388_v41 }
 0x1c5   :  { %v418_v44 = vpack.c.bf16 %v389_v43, %v387_v42 }
 0x1c7   :  { %510 = vmatmul.bf16.gmra.mxu2 %v418_v44 }
 0x1ca   :  { %v391_v45 = vpop.f32.mrf.mxu1 }
 0x1cb   :  { %v392_v47 = vadd.f32 %v953_v10, %v391_v45 }
 0x1d2   :  { %v393_v46 = vpop.f32.mrf.mxu1 }
 0x1d3   :  { %v394_v48 = vadd.f32 %v953_v10, %v393_v46 }
 0x1d5   :  { %v419_v49 = vpack.c.bf16 %v394_v48, %v392_v47 }
 0x1d7   :  { %515 = vmatmul.bf16.gmra.mxu2 %v419_v49 }
 0x1ea   :  { %v481_v50 = vpop.f32.mrf.mxu2 }
 0x1eb   :  { %v1217_v53 = vadd.f32 %v954_v51, %v481_v50 }
 0x1ed   :  { %v1297_v40 = vmul.f32 10.0, %v1217_v53 }
 0x1f2   :  { %v483_v52 = vpop.f32.mrf.mxu2 }
 0x1f3   :  { %v1219_v54 = vadd.f32 %v954_v51, %v483_v52 }
 0x1f5   :  { %v681_v55 = vpack.c.bf16 %v1219_v54, %v1217_v53 }
 0x1fa   :  { %v486_v56 = vpop.f32.mrf.mxu2 }
 0x1fb   :  { %v1223_v58 = vadd.f32 %v954_v51, %v486_v56 }
 0x1fd   :  { %v1301_v41 = vmul.f32 10.0, %v1223_v58 }
 0x202   :  { %v488_v57 = vpop.f32.mrf.mxu2 }
 0x203   :  { %v1225_v59 = vadd.f32 %v954_v51, %v488_v57 }
 0x205   :  { %v682_v60 = vpack.c.bf16 %v1225_v59, %v1223_v58  ;;  %v1292_v38 = vmul.f32 10.0, %v1225_v59 }
 0x20a   :  { %v491_v61 = vpop.f32.mrf.mxu2 }
 0x20b   :  { %v1229_v63 = vadd.f32 %v954_v51, %v491_v61 }
 0x20d   :  { %v1285_v35 = vmul.f32 10.0, %v1229_v63 }
 0x212   :  { %v493_v62 = vpop.f32.mrf.mxu2 }
 0x213   :  { %v1231_v0 = vadd.f32 %v954_v51, %v493_v62 }
 0x215   :  { %v683_v1 = vpack.c.bf16 %v1231_v0, %v1229_v63  ;;  %v1272_v26 = vmul.f32 10.0, %v1231_v0 }
 0x21a   :  { %v496_v2 = vpop.f32.mrf.mxu2 }
 0x21b   :  { %v1235_v4 = vadd.f32 %v954_v51, %v496_v2 }
 0x21d   :  { %v1265_v22 = vmul.f32 10.0, %v1235_v4 }
 0x222   :  { %v498_v3 = vpop.f32.mrf.mxu2 }
 0x223   :  { %v1237_v5 = vadd.f32 %v954_v51, %v498_v3 }
 0x225   :  { %v684_v6 = vpack.c.bf16 %v1237_v5, %v1235_v4  ;;  %v528_v39 = vmul.f32 10.0, %v1237_v5 }
 0x22a   :  { %v501_v7 = vpop.f32.mrf.mxu2 }
 0x22b   :  { %v1241_v9 = vadd.f32 %v954_v51, %v501_v7 }
 0x22d   :  { %v529_v37 = vmul.f32 10.0, %v1241_v9 }
 0x232   :  { %v503_v8 = vpop.f32.mrf.mxu2 }
 0x233   :  { %v1243_v10 = vadd.f32 %v954_v51, %v503_v8 }
 0x235   :  { %v685_v11 = vpack.c.bf16 %v1243_v10, %v1241_v9  ;;  %v530_v31 = vmul.f32 10.0, %v1243_v10 }
 0x23a   :  { %v506_v12 = vpop.f32.mrf.mxu2 }
 0x23b   :  { %v1247_v13 = vadd.f32 %v954_v51, %v506_v12 }
 0x23d   :  { %v1250_v14 = vmul.f32 10.0, %v1247_v13 }
 0x23f   :  { %557 = vmax.xlane.f32.xlu2 %v1250_v14 }
 0x242   :  { %v508_v15 = vpop.f32.mrf.mxu2 }
 0x243   :  { %v1253_v16 = vadd.f32 %v954_v51, %v508_v15 }
 0x245   :  { %v1256_v17 = vmul.f32 10.0, %v1253_v16  ;;  %v686_v18 = vpack.c.bf16 %v1253_v16, %v1247_v13 }
 0x247   :  { %559 = vmax.xlane.f32.xlu2 %v1256_v17 }
 0x24a   :  { %v511_v19 = vpop.f32.mrf.mxu2 }
 0x24b   :  { %v1261_v20 = vadd.f32 %v954_v51, %v511_v19  ;;  %v1312_v19 = vmul.f32 10.0, %v1219_v54 }
 0x24d   :  { %v533_v21 = vmul.f32 10.0, %v1261_v20 }
 0x24f   :  { %561 = vmax.xlane.f32.xlu1 %v533_v21  ;;  %549 = vmax.xlane.f32.xlu2 %v1265_v22 }
 0x252   :  { %v513_v23 = vpop.f32.mrf.mxu2 }
 0x253   :  { %v1268_v24 = vadd.f32 %v954_v51, %v513_v23 }
 0x255   :  { %v534_v25 = vmul.f32 10.0, %v1268_v24  ;;  %v687_v27 = vpack.c.bf16 %v1268_v24, %v1261_v20 }
 0x257   :  { %563 = vmax.xlane.f32.xlu1 %v534_v25  ;;  %547 = vmax.xlane.f32.xlu2 %v1272_v26 }
 0x25a   :  { %v516_v28 = vpop.f32.mrf.mxu2 }
 0x25b   :  { %v1277_v29 = vadd.f32 %v954_v51, %v516_v28 }
 0x25d   :  { %v535_v30 = vmul.f32 10.0, %v1277_v29 }
 0x25f   :  { %565 = vmax.xlane.f32.xlu0 %v535_v30  ;;  %555 = vmax.xlane.f32.xlu1 %v530_v31 }
 0x262   :  { %v518_v32 = vpop.f32.mrf.mxu2 }
 0x263   :  { %v1281_v33 = vadd.f32 %v954_v51, %v518_v32 }
 0x265   :  { %v536_v34 = vmul.f32 10.0, %v1281_v33  ;;  %v688_v36 = vpack.c.bf16 %v1281_v33, %v1277_v29 }
 0x267   :  { %567 = vmax.xlane.f32.xlu0 %v536_v34  ;;  %545 = vmax.xlane.f32.xlu1 %v1285_v35 }
 0x26f   :  { %553 = vmax.xlane.f32.xlu0 %v529_v37  ;;  %543 = vmax.xlane.f32.xlu1 %v1292_v38 }
 0x277   :  { %551 = vmax.xlane.f32.xlu0 %v528_v39  ;;  %537 = vmax.xlane.f32.xlu1 %v1297_v40 }
 0x27f   :  { %541 = vmax.xlane.f32.xlu0 %v1301_v41 }
 0x2b2   :  { %v558_v49 = vpop.xlane.xlu2 %557 }
 0x2b3   :  { %v579_v57 = vsub.f32 %v1250_v14, %v558_v49 }
 0x2b5   :  { %v605_v7 = vmul.f32 1.442695, %v579_v57 }
 0x2ba   :  { %v560_v3 = vpop.xlane.xlu2 %559 }
 0x2c2   :  { %v562_v42 = vpop.xlane.xlu1 %561  ;;  %v550_v32 = vpop.xlane.xlu2 %549 }
 0x2c3   :  { %v581_v62 = vsub.f32 %v533_v21, %v562_v42 }
 0x2c5   :  { %v609_v8 = vmul.f32 1.442695, %v581_v62 }
 0x2ca   :  { %v564_v43 = vpop.xlane.xlu1 %563 }
 0x2cb   :  { %v582_v44 = vsub.f32 %v534_v25, %v564_v43  ;;  %v580_v25 = vsub.f32 %v1256_v17, %v560_v3  ;;  %v575_v17 = vsub.f32 %v1265_v22, %v550_v32 }
 0x2cd   :  { %v611_v45 = vmul.f32 1.442695, %v582_v44 }
 0x2cf   :  { %955 = vpow2.f32 %v611_v45 }
 0x2d2   :  { %v566_v46 = vpop.xlane.xlu0 %565  ;;  %v556_v2 = vpop.xlane.xlu1 %555 }
 0x2d3   :  { %v583_v47 = vsub.f32 %v535_v30, %v566_v46  ;;  %v578_v21 = vsub.f32 %v530_v31, %v556_v2  ;;  %v607_v30 = vmul.f32 1.442695, %v580_v25 }
 0x2d5   :  { %v1304_v48 = vpop.eup %955  ;;  %v613_v50 = vmul.f32 1.442695, %v583_v47  ;;  %v597_v47 = vmul.f32 1.442695, %v575_v17 }
 0x2d6   :  { %643 = vadd.xlane.f32.xlu1 %v1304_v48 }
 0x2d7   :  { %957 = vpow2.f32 %v613_v50 }
 0x2da   :  { %v568_v51 = vpop.xlane.xlu0 %567  ;;  %v546_v28 = vpop.xlane.xlu1 %545 }
 0x2db   :  { %v584_v52 = vsub.f32 %v536_v34, %v568_v51  ;;  %v603_v34 = vmul.f32 1.442695, %v578_v21  ;;  %v573_v46 = vsub.f32 %v1285_v35, %v546_v28 }
 0x2dd   :  { %v1307_v56 = vpop.eup %957  ;;  %v615_v61 = vmul.f32 1.442695, %v584_v52  ;;  %v548_v52 = vpop.xlane.xlu2 %547 }
 0x2de   :  { %645 = vadd.xlane.f32.xlu2 %v1307_v56  ;;  %v574_v62 = vsub.f32 %v1272_v26, %v548_v52 }
 0x2df   :  { %959 = vpow2.f32 %v615_v61 }
 0x2e0   :  { %961 = vpow2.f32 %v605_v7  ;;  %v595_v3 = vmul.f32 1.442695, %v574_v62 }
 0x2e1   :  { %963 = vpow2.f32 %v609_v8 }
 0x2e2   :  { %v554_v12 = vpop.xlane.xlu0 %553  ;;  %v544_v49 = vpop.xlane.xlu1 %543 }
 0x2e3   :  { %v577_v15 = vsub.f32 %v529_v37, %v554_v12  ;;  %v572_v2 = vsub.f32 %v1292_v38, %v544_v49 }
 0x2e5   :  { %v1314_v23 = vpop.eup %959  ;;  %v601_v14 = vmul.f32 1.442695, %v577_v15  ;;  %v591_v7 = vmul.f32 1.442695, %v572_v2 }
 0x2e6   :  { %647 = vadd.xlane.f32.xlu0 %v1314_v23  ;;  %539 = vmax.xlane.f32.xlu2 %v1312_v19  ;;  %v1319_v42 = vpop.eup %961 }
 0x2e7   :  { %965 = vpow2.f32 %v601_v14  ;;  %v1321_v44 = vpop.eup %963 }
 0x2e8   :  { %967 = vpow2.f32 %v607_v30 }
 0x2e9   :  { %969 = vpow2.f32 %v603_v34 }
 0x2ea   :  { %v552_v37 = vpop.xlane.xlu0 %551  ;;  %v538_v12 = vpop.xlane.xlu1 %537 }
 0x2eb   :  { %v576_v43 = vsub.f32 %v528_v39, %v552_v37  ;;  %v593_v39 = vmul.f32 1.442695, %v573_v46  ;;  %v569_v26 = vsub.f32 %v1297_v40, %v538_v12 }
 0x2ed   :  { %v1323_v45 = vpop.eup %965  ;;  %v599_v31 = vmul.f32 1.442695, %v576_v43  ;;  %v585_v38 = vmul.f32 1.442695, %v569_v26 }
 0x2ee   :  { %641 = vadd.xlane.f32.xlu0 %v1321_v44  ;;  %637 = vadd.xlane.f32.xlu2 %v1319_v42  ;;  %v1330_v51 = vpop.eup %967 }
 0x2ef   :  { %971 = vpow2.f32 %v599_v31  ;;  %633 = vadd.xlane.f32.xlu1 %v1323_v45  ;;  %v1333_v57 = vpop.eup %969 }
 0x2f0   :  { %973 = vpow2.f32 %v597_v47 }
 0x2f1   :  { %975 = vpow2.f32 %v593_v39 }
 0x2f2   :  { %v542_v50 = vpop.xlane.xlu0 %541 }
 0x2f3   :  { %v571_v22 = vsub.f32 %v1301_v41, %v542_v50 }
 0x2f5   :  { %v1335_v61 = vpop.eup %971  ;;  %v589_v35 = vmul.f32 1.442695, %v571_v22 }
 0x2f6   :  { %639 = vadd.xlane.f32.xlu0 %v1330_v51  ;;  %635 = vadd.xlane.f32.xlu2 %v1333_v57  ;;  %v1342_v41 = vpop.eup %973 }
 0x2f7   :  { %977 = vpow2.f32 %v589_v35  ;;  %631 = vadd.xlane.f32.xlu1 %v1335_v61  ;;  %v1344_v8 = vpop.eup %975 }
 0x2f8   :  { %979 = vpow2.f32 %v595_v3 }
 0x2f9   :  { %981 = vpow2.f32 %v591_v7 }
 0x2fa   :  { %983 = vpow2.f32 %v585_v38 }
 0x2fd   :  { %v1346_v15 = vpop.eup %977 }
 0x2fe   :  { %629 = vadd.xlane.f32.xlu0 %v1342_v41  ;;  %625 = vadd.xlane.f32.xlu2 %v1344_v8  ;;  %v1352_v25 = vpop.eup %979 }
 0x2ff   :  { %621 = vadd.xlane.f32.xlu1 %v1346_v15  ;;  %v1354_v14 = vpop.eup %981 }
 0x300   :  { %v1358_v21 = vpop.eup %983 }
 0x306   :  { %627 = vadd.xlane.f32.xlu0 %v1352_v25  ;;  %623 = vadd.xlane.f32.xlu2 %v1354_v14 }
 0x30e   :  { %617 = vadd.xlane.f32.xlu0 %v1358_v21 }
 0x349   :  { %v644_v37 = vpop.xlane.xlu1 %643 }
 0x351   :  { %v646_v28 = vpop.xlane.xlu2 %645 }
 0x352   :  { %985 = vrcp.f32 %v646_v28 }
 0x358   :  { %v986_v43 = vpop.eup %985 }
 0x359   :  { %v648_v30 = vpop.xlane.xlu0 %647  ;;  %v540_v40 = vpop.xlane.xlu2 %539  ;;  %v679_v47 = vmul.f32 %v986_v43, %v1307_v56 }
 0x35a   :  { %987 = vrcp.f32 %v648_v30  ;;  %v570_v32 = vsub.f32 %v1312_v19, %v540_v40 }
 0x35c   :  { %v587_v34 = vmul.f32 1.442695, %v570_v32 }
 0x35e   :  { %989 = vpow2.f32 %v587_v34 }
 0x35f   :  { %991 = vrcp.f32 %v644_v37 }
 0x360   :  { %v988_v17 = vpop.eup %987 }
 0x361   :  { %v642_v31 = vpop.xlane.xlu0 %641  ;;  %v638_v46 = vpop.xlane.xlu2 %637  ;;  %v680_v39 = vmul.f32 %v988_v17, %v1314_v23 }
 0x362   :  { %993 = vrcp.f32 %v642_v31  ;;  %v634_v2 = vpop.xlane.xlu1 %633 }
 0x363   :  { %v696_v49 = vpack.c.bf16 %v680_v39, %v679_v47  ;;  %995 = vrcp.f32 %v638_v46 }
 0x364   :  { %v1364_v50 = vpop.eup %989 }
 0x365   :  { %697 = vmatpush.bf16.xpose.msra.mxu3 %v696_v49  ;;  %619 = vadd.xlane.f32.xlu1 %v1364_v50  ;;  %v992_v19 = vpop.eup %991 }
 0x366   :  { %v678_v62 = vmul.f32 %v992_v19, %v1304_v48 }
 0x368   :  { %v994_v52 = vpop.eup %993 }
 0x369   :  { %v640_v22 = vpop.xlane.xlu0 %639  ;;  %v677_v35 = vmul.f32 %v994_v52, %v1321_v44  ;;  %v636_v56 = vpop.xlane.xlu2 %635 }
 0x36a   :  { %997 = vrcp.f32 %v640_v22  ;;  %v996_v23 = vpop.eup %995  ;;  %v632_v40 = vpop.xlane.xlu1 %631 }
 0x36b   :  { %v695_v3 = vpack.c.bf16 %v678_v62, %v677_v35  ;;  %999 = vrcp.f32 %v636_v56  ;;  %v675_v26 = vmul.f32 %v996_v23, %v1319_v42 }
 0x36c   :  { %1001 = vrcp.f32 %v634_v2 }
 0x36d   :  { %698 = vmatpush.bf16.xpose.msra.mxu3 %v695_v3 }
 0x370   :  { %v998_v7 = vpop.eup %997 }
 0x371   :  { %v630_v12 = vpop.xlane.xlu0 %629  ;;  %v676_v38 = vmul.f32 %v998_v7, %v1330_v51  ;;  %v1000_v30 = vpop.eup %999 }
 0x372   :  { %v1002_v44 = vpop.eup %1001  ;;  %1003 = vrcp.f32 %v630_v12  ;;  %v674_v48 = vmul.f32 %v1000_v30, %v1333_v57  ;;  %v626_v32 = vpop.xlane.xlu2 %625 }
 0x373   :  { %v694_v28 = vpack.c.bf16 %v676_v38, %v675_v26  ;;  %1005 = vrcp.f32 %v632_v40  ;;  %v673_v34 = vmul.f32 %v1002_v44, %v1323_v45  ;;  %v622_v49 = vpop.xlane.xlu1 %621 }
 0x375   :  { %699 = vmatpush.bf16.xpose.msra.mxu3 %v694_v28  ;;  %v693_v43 = vpack.c.bf16 %v674_v48, %v673_v34 }
 0x378   :  { %v1004_v17 = vpop.eup %1003 }
 0x379   :  { %v628_v37 = vpop.xlane.xlu0 %627  ;;  %v1006_v31 = vpop.eup %1005  ;;  %v671_v42 = vmul.f32 %v1004_v17, %v1342_v41 }
 0x37a   :  { %1007 = vrcp.f32 %v628_v37  ;;  %v672_v51 = vmul.f32 %v1006_v31, %v1335_v61  ;;  %v624_v46 = vpop.xlane.xlu2 %623 }
 0x37b   :  { %1009 = vrcp.f32 %v626_v32 }
 0x37c   :  { %v692_v47 = vpack.c.bf16 %v672_v51, %v671_v42  ;;  %1011 = vrcp.f32 %v624_v46 }
 0x37d   :  { %700 = vmatpush.bf16.xpose.msra.mxu3 %v693_v43  ;;  %1013 = vrcp.f32 %v622_v49 }
 0x380   :  { %v1008_v39 = vpop.eup %1007 }
 0x381   :  { %v1010_v57 = vpop.eup %1009  ;;  %v670_v45 = vmul.f32 %v1008_v39, %v1352_v25  ;;  %v618_v2 = vpop.xlane.xlu0 %617 }
 0x382   :  { %v669_v19 = vmul.f32 %v1010_v57, %v1344_v8  ;;  %v1012_v22 = vpop.eup %1011  ;;  %1015 = vrcp.f32 %v618_v2 }
 0x383   :  { %v1014_v35 = vpop.eup %1013  ;;  %v668_v41 = vmul.f32 %v1012_v22, %v1354_v14 }
 0x384   :  { %v691_v52 = vpack.c.bf16 %v670_v45, %v669_v19  ;;  %v667_v61 = vmul.f32 %v1014_v35, %v1346_v15 }
 0x385   :  { %701 = vmatpush.bf16.xpose.msra.mxu3 %v692_v47 }
 0x386   :  { %v690_v62 = vpack.c.bf16 %v668_v41, %v667_v61 }
 0x388   :  { %v1016_v3 = vpop.eup %1015 }
 0x389   :  { %v665_v25 = vmul.f32 %v1016_v3, %v1358_v21 }
 0x38d   :  { %702 = vmatpush.bf16.xpose.msra.mxu3 %v691_v52 }
 0x395   :  { %703 = vmatpush.bf16.xpose.msra.mxu3 %v690_v62 }
 0x3d8   :  { %v620_v56 = vpop.xlane.xlu1 %619 }
 0x3d9   :  { %1017 = vrcp.f32 %v620_v56 }
 0x3df   :  { %v1018_v23 = vpop.eup %1017 }
 0x3e0   :  { %v666_v8 = vmul.f32 %v1018_v23, %v1364_v50 }
 0x3e2   :  { %v689_v7 = vpack.c.bf16 %v666_v8, %v665_v25 }
 0x3e4   :  { %704 = vmatpush.bf16.xpose.msra.mxu3 %v689_v7 }
 0x3eb   :  { %705 = vmatmul.bf16.vlgmr.msra.gmra.mxu3 %v681_v55 }
 0x3fb   :  { %710 = vmatmul.bf16.gmra.mxu3 %v682_v60 }
 0x40b   :  { %715 = vmatmul.bf16.gmra.mxu3 %v683_v1 }
 0x41b   :  { %720 = vmatmul.bf16.gmra.mxu3 %v684_v6 }
 0x42b   :  { %725 = vmatmul.bf16.gmra.mxu3 %v685_v11 }
 0x43b   :  { %730 = vmatmul.bf16.gmra.mxu3 %v686_v18 }
 0x44b   :  { %735 = vmatmul.bf16.gmra.mxu3 %v687_v27 }
 0x45b   :  { %740 = vmatmul.bf16.gmra.mxu3 %v688_v36 }
 0x46e   :  { %v706_v53 = vpop.f32.mrf.mxu3 }
 0x46f   :  { %746 = vst [vmem:[#allocation10] sm:$0xff] %v706_v53 }
 0x476   :  { %v708_v54 = vpop.f32.mrf.mxu3 }
 0x477   :  { %747 = vst [vmem:[#allocation10 + $0x8] sm:$0xff] %v708_v54 }
 0x47e   :  { %v711_v55 = vpop.f32.mrf.mxu3 }
 0x47f   :  { %748 = vst [vmem:[#allocation10 + $0x10] sm:$0xff] %v711_v55 }
 0x486   :  { %v713_v58 = vpop.f32.mrf.mxu3 }
 0x487   :  { %749 = vst [vmem:[#allocation10 + $0x18] sm:$0xff] %v713_v58 }
 0x48e   :  { %v716_v59 = vpop.f32.mrf.mxu3 }
 0x48f   :  { %750 = vst [vmem:[#allocation10 + $0x20] sm:$0xff] %v716_v59 }
 0x496   :  { %v718_v60 = vpop.f32.mrf.mxu3 }
 0x497   :  { %751 = vst [vmem:[#allocation10 + $0x28] sm:$0xff] %v718_v60 }
 0x49e   :  { %v721_v63 = vpop.f32.mrf.mxu3 }
 0x49f   :  { %752 = vst [vmem:[#allocation10 + $0x30] sm:$0xff] %v721_v63 }
 0x4a6   :  { %v723_v0 = vpop.f32.mrf.mxu3 }
 0x4a7   :  { %753 = vst [vmem:[#allocation10 + $0x38] sm:$0xff] %v723_v0 }
 0x4ae   :  { %v726_v1 = vpop.f32.mrf.mxu3 }
 0x4af   :  { %754 = vst [vmem:[#allocation10 + $0x40] sm:$0xff] %v726_v1 }
 0x4b6   :  { %v728_v4 = vpop.f32.mrf.mxu3 }
 0x4b7   :  { %755 = vst [vmem:[#allocation10 + $0x48] sm:$0xff] %v728_v4 }
 0x4be   :  { %v731_v5 = vpop.f32.mrf.mxu3 }
 0x4bf   :  { %756 = vst [vmem:[#allocation10 + $0x50] sm:$0xff] %v731_v5 }
 0x4c6   :  { %v733_v6 = vpop.f32.mrf.mxu3 }
 0x4c7   :  { %757 = vst [vmem:[#allocation10 + $0x58] sm:$0xff] %v733_v6 }
 0x4ce   :  { %v736_v9 = vpop.f32.mrf.mxu3 }
 0x4cf   :  { %758 = vst [vmem:[#allocation10 + $0x60] sm:$0xff] %v736_v9 }
 0x4d6   :  { %v738_v10 = vpop.f32.mrf.mxu3 }
 0x4d7   :  { %759 = vst [vmem:[#allocation10 + $0x68] sm:$0xff] %v738_v10 }
 0x4de   :  { %v741_v11 = vpop.f32.mrf.mxu3 }
 0x4df   :  { %760 = vst [vmem:[#allocation10 + $0x70] sm:$0xff] %v741_v11 }
 0x4e6   :  { %v743_v13 = vpop.f32.mrf.mxu3 }
 0x4e7   :  { %761 = vst [vmem:[#allocation10 + $0x78] sm:$0xff] %v743_v13 }
 0x4e8   :  { %774 = dma.vmem_to_hbm [thread:$0]  %s767_s23, 2048, %s769_s26, [#allocation4], %s1154_s27, %s1154_s27, %s1155_s28  }
 0x4e9   :  { %1145 = dma.done.wait [#allocation4], 2048  }
 0x4ea   :  { %1146 = vsyncadd [#allocation4], 4294965248 }
 0x4eb   :  { %779 = vsyncpa [#allocation3], 1 }
 0x4ec   :  { %780 = vsyncpa [#allocation6], 1 }
 0x4ed   :  { %781 = vsyncpa [#allocation9], 1 }
 0x4ee   :  { %782 = vsyncpa [#allocation4], 1 }

</bundles_post_ra>
